<compile_context>
chip_gen: v7x
topology: tpu7x:2x2x1
jax: 0.10.0
libtpu: 0.0.40
codegen_flags: <defaults>
</compile_context>

<pallas_src>
import functools

import jax
import jax.numpy as jnp
from jax.experimental import pallas as pl
from jax.experimental.pallas import tpu as pltpu


def _round_up(x, m):
    return (x + m - 1) // m * m


def _max_lane_tile(default=512):
    # Larger tiles on 128-MiB-VMEM parts (v5e/v6e); conservative on v7x (64 MiB).
    try:
        info = pltpu.get_tpu_info()
        if getattr(info, "vmem_capacity_bytes", 0) >= (96 << 20):
            return 1024
    except Exception:
        pass
    return default


def _pick_lane_tile(m, max_tile):
    # Lane tile: multiple of 128, divides the padded extent exactly, and (when
    # possible) yields >= 2 tiles so the parallel grid axis shards across both
    # v7x TensorCores.
    m_pad = _round_up(m, 128)
    tile = max(128, min(max_tile, m_pad) // 128 * 128)
    while m_pad % tile:
        tile -= 128
    if m_pad // tile < 2 and m_pad >= 256:
        half = max(128, (tile // 2) // 128 * 128)
        while m_pad % half:
            half -= 128
        tile = half
    return tile, m_pad


# --------------- Pallas kernel 1: point-wise feature extractor ---------------
def _feat_kernel(w_ref, b_ref, x_ref, o_ref):
    x = x_ref[...].astype(jnp.float32)            # (C, T)
    w = w_ref[...]                                # (F, C) f32
    b = b_ref[...]                                # (F, 1) f32
    f, c = w.shape
    t = x.shape[-1]
    acc = jnp.broadcast_to(b, (f, t))
    for ci in range(c):                           # C is tiny: VPU broadcast MADs, no MXU
        acc = acc + w[:, ci:ci + 1] * x[ci:ci + 1, :]
    o_ref[...] = acc.astype(o_ref.dtype)


def feature_extract(w_fe, b_fe, x, max_tile=8192):
    # x: (N, C, M) channel-major images with flattened spatial axis last -> (N, F, M) f32.
    # Blocks are tiny ((C+F)*tile words), so use a big lane tile; f32 output keeps the
    # store sublane-dense even when F < 16.
    n, c, m = x.shape
    f = w_fe.shape[0]
    tile, m_pad = _pick_lane_tile(m, max_tile)
    if m_pad != m:
        x = jnp.pad(x, ((0, 0), (0, 0), (0, m_pad - m)))   # small (C-channel) pad only
    out = pl.pallas_call(
        _feat_kernel,
        out_shape=jax.ShapeDtypeStruct((n, f, m_pad), jnp.float32),
        grid_spec=pltpu.PrefetchScalarGridSpec(
            num_scalar_prefetch=0,
            grid=(n, m_pad // tile),
            in_specs=[
                pl.BlockSpec((f, c), lambda ni, i: (0, 0)),
                pl.BlockSpec((f, 1), lambda ni, i: (0, 0)),
                pl.BlockSpec((None, c, tile), lambda ni, i: (ni, 0, i)),
            ],
            out_specs=pl.BlockSpec((None, f, tile), lambda ni, i: (ni, 0, i)),
        ),
        compiler_params=pltpu.CompilerParams(
            dimension_semantics=("parallel", "parallel")),
    )(w_fe, b_fe, x)
    return out[..., :m] if m_pad != m else out


# ------- Pallas kernel 2: view-sum of distance volume + softmax over depth ----
def _costv_kernel(dist_ref, o_ref, *, sigma, n_views):
    # dist_ref: (V, D, T) per-view L2 feature distances; o_ref: (D, T).
    acc = dist_ref[0].astype(jnp.float32)
    for vi in range(1, n_views):                  # V is tiny: whole-block VPU adds
        acc = acc + dist_ref[vi].astype(jnp.float32)
    neg = acc * (-1.0 / (n_views * sigma))        # -costV
    mx = jnp.max(neg, axis=0, keepdims=True)      # softmax over depth (torch dim=1)
    e = jnp.exp(neg - mx)
    s = jnp.sum(e, axis=0, keepdims=True)
    o_ref[...] = (e / s).astype(o_ref.dtype)      # exact divide: prob volume sums to 1


def costv_softmax(dist, sigma_soft_max, tile):
    v, d, m_pad = dist.shape
    assert m_pad % tile == 0
    kern = functools.partial(_costv_kernel, sigma=float(sigma_soft_max), n_views=v)
    # Tight VMEM budget: double-buffered (V, D, tile) input + (D, tile) output blocks
    # plus in-kernel f32 temporaries; comfortably below v7x's 64 MiB.
    vmem_bytes = (2 * v * d * tile * 4        # double-buffered input blocks
                  + 2 * d * tile * 4          # double-buffered output blocks
                  + 6 * d * tile * 4          # in-kernel f32 temporaries (acc/exp/softmax)
                  + (4 << 20))                # headroom
    vmem_bytes = int(min(max(vmem_bytes, 8 << 20), 56 << 20))
    return pl.pallas_call(
        kern,
        out_shape=jax.ShapeDtypeStruct((d, m_pad), jnp.float32),
        grid_spec=pltpu.PrefetchScalarGridSpec(
            num_scalar_prefetch=0,
            grid=(m_pad // tile,),
            in_specs=[pl.BlockSpec((v, d, tile), lambda i: (0, 0, i))],
            out_specs=pl.BlockSpec((d, tile), lambda i: (0, i)),
        ),
        compiler_params=pltpu.CompilerParams(
            dimension_semantics=("parallel",),
            vmem_limit_bytes=vmem_bytes),
    )(dist)


# --------------- plain-JAX glue: homography warp + L2 distance ----------------
def _bilinear_sample_flat(feat_flat, h, w, x, y):
    # feat_flat: (F, H*W) f32; x, y: (M,) source-view pixel coords.
    # grid_sample(padding_mode='zeros') semantics: out-of-bounds taps contribute zero.
    x0 = jnp.floor(x)
    y0 = jnp.floor(y)
    x1 = x0 + 1.0
    y1 = y0 + 1.0
    wx1 = x - x0
    wx0 = 1.0 - wx1
    wy1 = y - y0
    wy0 = 1.0 - wy1

    def tap(xi, yi, wgt):
        valid = (xi >= 0) & (xi <= w - 1) & (yi >= 0) & (yi <= h - 1)
        xi_c = jnp.clip(xi, 0, w - 1).astype(jnp.int32)
        yi_c = jnp.clip(yi, 0, h - 1).astype(jnp.int32)
        idx = yi_c * w + xi_c                                  # single flat HW index
        vals = jnp.take(feat_flat, idx, axis=1)                # one-axis gather
        return vals * (wgt * valid.astype(jnp.float32))[None, :]

    return (tap(x0, y0, wx0 * wy0) + tap(x1, y0, wx1 * wy0)
            + tap(x0, y1, wx0 * wy1) + tap(x1, y1, wx1 * wy1))


def warp_dist_volume(feat_ref, feat_src, K, Rs, ts, d_candi, m_pad):
    # TODO(synk): the grid_sample-style data-dependent bilinear gather has no clean
    # Pallas/TPU equivalent here; it stays in plain JAX (flattened single-axis take).
    # The F-reduction (L2 over feature channels) happens right here, so only a
    # (V, D, HW) distance volume ever round-trips HBM.
    v, f, h, w = feat_src.shape
    m = h * w
    k_inv = jnp.linalg.inv(K)
    uu, vv = jnp.meshgrid(
        jnp.arange(w, dtype=jnp.float32),
        jnp.arange(h, dtype=jnp.float32),
        indexing="xy",
    )
    pix = jnp.stack([uu.ravel(), vv.ravel(), jnp.ones(m, jnp.float32)], axis=0)
    if m_pad != m:
        # pad the pixel grid, not the big output volume (padded lanes sliced off later)
        pix = jnp.pad(pix, ((0, 0), (0, m_pad - m)), mode="edge")
        feat_ref = jnp.pad(feat_ref, ((0, 0), (0, m_pad - m)))
    rays = k_inv @ pix                                         # (3, m_pad), z == 1
    feat_src_flat = feat_src.reshape(v, f, m)

    dist_v = []
    for vi in range(v):
        per_d = []
        for di in range(d_candi.shape[0]):
            pts = rays * d_candi[di]                           # 3-D points on depth plane
            pts_src = Rs[vi] @ pts + ts[vi][:, None]           # ref cam -> src cam
            proj = K @ pts_src
            z = jnp.maximum(proj[2], 1e-6)
            warped = _bilinear_sample_flat(
                feat_src_flat[vi], h, w, proj[0] / z, proj[1] / z)   # (F, m_pad)
            diff = warped - feat_ref
            per_d.append(jnp.sqrt(jnp.sum(diff * diff, axis=0)))     # (m_pad,) L2 over F
        dist_v.append(jnp.stack(per_d, axis=0))
    return jnp.stack(dist_v, axis=0)                           # (V, D, m_pad) f32


# ------------------------------- forward pass --------------------------------
def d_net_basic_forward(ref_frame, src_frames, src_cam_poses, K, d_candi,
                        sigma_soft_max, w_fe, b_fe, max_tile=None):
    assert src_frames.shape[0] == 1, "dim0 of src_frames should be 1"
    _, v, c, h, w = src_frames.shape
    f = w_fe.shape[0]
    d = d_candi.shape[0]
    m = h * w
    if max_tile is None:
        max_tile = _max_lane_tile()
    tile, m_pad = _pick_lane_tile(m, max_tile)

    # torch.cat((src_frames[0], ref_frame), dim=0) -> feature extraction.
    imgs = jnp.concatenate([src_frames[0], ref_frame], axis=0)        # (V+1, C, H, W)
    feats = feature_extract(w_fe, b_fe, imgs.reshape(v + 1, c, m))    # (V+1, F, HW) f32
    feat_src = feats[:v].reshape(v, f, h, w)                          # feat_imgs_src
    feat_ref = feats[v]                                               # feat_img_ref (F, HW)

    rs = src_cam_poses[0, :, :3, :3]
    ts = src_cam_poses[0, :, :3, 3]
    # plane-sweep warp + per-(view, depth) L2 feature distance -> (V, D, m_pad) f32
    dist = warp_dist_volume(feat_ref, feat_src, K, rs, ts, d_candi, m_pad)

    bv_flat = costv_softmax(dist, sigma_soft_max, tile)               # (D, m_pad)
    if m_pad != m:
        bv_flat = bv_flat[:, :m]
    return bv_flat.reshape(1, d, h, w)                                # N x D x H x W


# ----------------------------------- main -------------------------------------
if __name__ == "__main__":
    key = jax.random.PRNGKey(0)
    n, v, c, h, w = 1, 2, 3, 16, 16
    f, d = 8, 8
    sigma_soft_max = 10.0
    d_candi = jnp.linspace(0.5, 4.0, d).astype(jnp.float32)

    k1, k2, k3 = jax.random.split(key, 3)
    ref_frame = jax.random.normal(k1, (n, c, h, w), jnp.float32)
    src_frames = jax.random.normal(k2, (n, v, c, h, w), jnp.float32)

    # relative camera poses: identity rotation + small translations
    poses = jnp.tile(jnp.eye(4, dtype=jnp.float32)[None, None], (n, v, 1, 1))
    trans = jnp.array([[0.05, 0.0, 0.0], [0.0, 0.05, 0.0]], jnp.float32)
    poses = poses.at[0, :, :3, 3].set(trans)

    # pinhole intrinsics
    K = jnp.array(
        [[float(w), 0.0, w / 2.0], [0.0, float(h), h / 2.0], [0.0, 0.0, 1.0]],
        jnp.float32,
    )

    # deterministic feature-extractor params (He-style scale, fixed seed)
    w_fe = jax.random.normal(k3, (f, c), jnp.float32) * (2.0 / c) ** 0.5
    b_fe = jnp.zeros((f, 1), jnp.float32)

    bv = d_net_basic_forward(
        ref_frame, src_frames, poses, K, d_candi, sigma_soft_max, w_fe, b_fe)
    bv = jax.block_until_ready(bv)

    assert bv.shape == (n, d, h, w)
    # probability cost volume: softmax over depth sums to 1 (exact divide in-kernel)
    assert bool(jnp.allclose(jnp.sum(bv, axis=1), 1.0, atol=1e-4))
    print("KERNEL_OK")
</pallas_src>

<mosaic_0001>
module attributes {stable_mosaic.version = 11 : i64} {
  func.func @_feat_kernel(%arg0: i32, %arg1: i32, %arg2: memref<8x3xf32, #tpu.memory_space<vmem>>, %arg3: memref<8x1xf32, #tpu.memory_space<vmem>>, %arg4: memref<1x3x128xf32, #tpu.memory_space<vmem>>, %arg5: memref<1x8x128xf32, #tpu.memory_space<vmem>>) attributes {dimension_semantics = [#tpu.dimension_semantics<parallel>, #tpu.dimension_semantics<parallel>], iteration_bounds = array<i64: 3, 2>, scalar_prefetch = 0 : i64, scratch_operands = 0 : i64, tpu.core_type = #tpu.core_type<tc>, window_params = [{pipeline_mode = #tpu.pipeline_mode<synchronous>, transform_indices = @transform_0, window_bounds = array<i64: 8, 3>}, {pipeline_mode = #tpu.pipeline_mode<synchronous>, transform_indices = @transform_1, window_bounds = array<i64: 8, 1>}, {transform_indices = @transform_2, window_bounds = array<i64: 1, 3, 128>}, {transform_indices = @transform_3, window_bounds = array<i64: 1, 8, 128>}]} {
    %c0 = arith.constant 0 : index
    %c0_0 = arith.constant 0 : index
    %c0_1 = arith.constant 0 : index
    %0 = vector.load %arg4[%c0, %c0_0, %c0_1] : memref<1x3x128xf32, #tpu.memory_space<vmem>>, vector<1x3x128xf32>
    %1 = vector.shape_cast %0 : vector<1x3x128xf32> to vector<3x128xf32>
    %c0_2 = arith.constant 0 : index
    %c0_3 = arith.constant 0 : index
    %2 = vector.load %arg2[%c0_2, %c0_3] : memref<8x3xf32, #tpu.memory_space<vmem>>, vector<8x3xf32>
    %c0_4 = arith.constant 0 : index
    %c0_5 = arith.constant 0 : index
    %3 = vector.load %arg3[%c0_4, %c0_5] : memref<8x1xf32, #tpu.memory_space<vmem>>, vector<8x1xf32>
    %4 = vector.shape_cast %3 : vector<8x1xf32> to vector<8x1xf32>
    %5 = vector.broadcast %4 : vector<8x1xf32> to vector<8x128xf32>
    %6 = vector.extract_strided_slice %2 {offsets = [0, 0], sizes = [8, 1], strides = [1, 1]} : vector<8x3xf32> to vector<8x1xf32>
    %7 = vector.extract_strided_slice %1 {offsets = [0, 0], sizes = [1, 128], strides = [1, 1]} : vector<3x128xf32> to vector<1x128xf32>
    %8 = vector.broadcast %6 : vector<8x1xf32> to vector<8x128xf32>
    %9 = vector.broadcast %7 : vector<1x128xf32> to vector<8x128xf32>
    %10 = arith.mulf %8, %9 : vector<8x128xf32>
    %11 = arith.addf %5, %10 : vector<8x128xf32>
    %12 = vector.extract_strided_slice %2 {offsets = [0, 1], sizes = [8, 1], strides = [1, 1]} : vector<8x3xf32> to vector<8x1xf32>
    %13 = vector.extract_strided_slice %1 {offsets = [1, 0], sizes = [1, 128], strides = [1, 1]} : vector<3x128xf32> to vector<1x128xf32>
    %14 = vector.broadcast %12 : vector<8x1xf32> to vector<8x128xf32>
    %15 = vector.broadcast %13 : vector<1x128xf32> to vector<8x128xf32>
    %16 = arith.mulf %14, %15 : vector<8x128xf32>
    %17 = arith.addf %11, %16 : vector<8x128xf32>
    %18 = vector.extract_strided_slice %2 {offsets = [0, 2], sizes = [8, 1], strides = [1, 1]} : vector<8x3xf32> to vector<8x1xf32>
    %19 = vector.extract_strided_slice %1 {offsets = [2, 0], sizes = [1, 128], strides = [1, 1]} : vector<3x128xf32> to vector<1x128xf32>
    %20 = vector.broadcast %18 : vector<8x1xf32> to vector<8x128xf32>
    %21 = vector.broadcast %19 : vector<1x128xf32> to vector<8x128xf32>
    %22 = arith.mulf %20, %21 : vector<8x128xf32>
    %23 = arith.addf %17, %22 : vector<8x128xf32>
    %c0_6 = arith.constant 0 : index
    %c0_7 = arith.constant 0 : index
    %c0_8 = arith.constant 0 : index
    %24 = vector.load %arg5[%c0_6, %c0_7, %c0_8] : memref<1x8x128xf32, #tpu.memory_space<vmem>>, vector<1x8x128xf32>
    %25 = vector.shape_cast %24 : vector<1x8x128xf32> to vector<8x128xf32>
    %26 = vector.shape_cast %23 : vector<8x128xf32> to vector<1x8x128xf32>
    tpu.vector_store %arg5[%c0_6, %c0_7, %c0_8], %26 {strides = array<i32>} : memref<1x8x128xf32, #tpu.memory_space<vmem>>, vector<1x8x128xf32>,
    return
  }
  func.func @transform_0(%arg0: i32, %arg1: i32) -> (i32, i32) {
    %c0_i32 = arith.constant 0 : i32
    %c0_i32_0 = arith.constant 0 : i32
    %c0_i32_1 = arith.constant 0 : i32
    return %c0_i32, %c0_i32_0 : i32, i32
  }
  func.func @transform_1(%arg0: i32, %arg1: i32) -> (i32, i32) {
    %c0_i32 = arith.constant 0 : i32
    %c0_i32_0 = arith.constant 0 : i32
    %c0_i32_1 = arith.constant 0 : i32
    return %c0_i32, %c0_i32_0 : i32, i32
  }
  func.func @transform_2(%arg0: i32, %arg1: i32) -> (i32, i32, i32) {
    %c0_i32 = arith.constant 0 : i32
    %c0_i32_0 = arith.constant 0 : i32
    return %arg0, %c0_i32, %arg1 : i32, i32, i32
  }
  func.func @transform_3(%arg0: i32, %arg1: i32) -> (i32, i32, i32) {
    %c0_i32 = arith.constant 0 : i32
    %c0_i32_0 = arith.constant 0 : i32
    return %arg0, %c0_i32, %arg1 : i32, i32, i32
  }
}

</mosaic_0001>

<bundles_post_ra>
// kernel: tpu_custom_call.1
= control target key start
LH: loop header
LB: loop body
LE: loop exit
PB: predicated region body
PF: predicated region fallthrough
CT: control target
= control target key end

     0   :  { %8 = vsyncpa [#allocation3], 0  ;;  %s682_s0 = inlined_call_operand.vmem [shape: f32[8,3], index: 0, kind: input, shape index: {}]   ;;  %s683_s1 = inlined_call_operand.vmem [shape: f32[8,1], index: 1, kind: input, shape index: {}]   ;;  %s684_s2 = inlined_call_operand.vmem [shape: f32[3,3,256], index: 2, kind: input, shape index: {}]   ;;  %s685_s3 = inlined_call_operand.hbm [shape: f32[3,8,256], index: 3, kind: output, shape index: {}]  }
   0x1   :  { %10 = vsyncpa [#allocation3 + $0x1], 0  ;;  %s539_s12 = smov 0   ;;  %s541_s13 = smov 0  }
   0x2   :  { %s543_s14 = smov 0   ;;  %s545_s15 = smov 0  }
   0x3   :  { %s547_s16 = smov 0   ;;  %s549_s17 = smov 0  }
   0x4   :  { %s551_s18 = smov 0   ;;  %s553_s19 = smov 0  }
   0x5 LB: > { %s328_s20 = sadd.s32 4294967295, %s513_s19   ;;  %s329_s21 = sadd.s32 4294967294, %s513_s19   ;;  %s513_s19 = sphi %s553_s19, %s16_s19   ;;  %s509_s18 = sphi %s551_s18, %s694_s18   ;;  %s505_s17 = sphi %s549_s17, %s693_s17   ;;  %s501_s16 = sphi %s547_s16, %s692_s16   ;;  %s497_s15 = sphi %s545_s15, %s691_s15   ;;  %s493_s14 = sphi %s543_s14, %s690_s14   ;;  %s489_s13 = sphi %s541_s13, %s689_s13   ;;  %s485_s12 = sphi %s539_s12, %s688_s12  }
   0x6   : > { %s25_s22 = sadd.s32 1, %s505_s17  ;;  %s28_s23 = sadd.s32 1, %s509_s18 }
   0x7   : > { %p26_p0 = scmp.ge.s32.totalorder %s25_s22, 2  ;;  %p117_p1 = scmp.ne.s32.totalorder %s493_s14, %s489_s13 }
   0x8   : > { %p118_p2 = scmp.eq.s32.totalorder %s328_s20, 5  ;;  %p123_p5 = scmp.ne.s32.totalorder %s489_s13, %s485_s12 }
   0x9   : > { %s696_s22 = smov (%p26_p0, %s25_s22), 0  ;;  %s698_s23 = smov (!%p26_p0, %s28_s23), %s509_s18 }
   0xa   : > { %s103_s24 = ssub.s32 %s505_s17, %s696_s22  ;;  %p590_p3 = por %p118_p2, %p117_p1 }
   0xb   : > { %p30_p4 = scmp.ge.s32.totalorder %s698_s23, 3  ;;  %p124_p6 = scmp.eq.s32.totalorder %s329_s21, 5 }
   0xc   : > { %p332_p7 = scmp.ge.s32.totalorder %s513_s19, 1  ;;  %p159_p9 = scmp.lt.s32.totalorder %s513_s19, 7 }
   0xd   : > { %s700_s23 = smov (%p30_p4, %s698_s23), 0  ;;  %p599_p8 = por %p124_p6, %p123_p5 }
   0xe   : > { %s102_s27 = ssub.s32 %s509_s18, %s700_s23  ;;  %s107_s28 = sadd.s32 1, %s493_s14 }
   0xf   : > { %s104_s29 = sor.u32 %s103_s24, %s102_s27  ;;  %p160_p10 = pnand %p332_p7, %p159_p9 }
  0x10   : > { %p105_p11 = scmp.eq.s32.totalorder %s104_s29, 0  ;;  %v195_v0 = vld [vmem:[%s682_s0] sm:$0xff] (!%p160_p10)  ;;  %v515_v1 = vmov (!%p160_p10), 0   ;;  %v516_v2 = vmov (!%p160_p10), 1   ;;  %v517_v4 = vmov (!%p160_p10), 2   ;;  %p186_p12 = scmp.lt.s32.totalorder (!%p160_p10), %s501_s16, 2  ;;  %v207_v5 = vlaneseq (!%p160_p10) }
  0x11   : > { %163 = sbr.rel (%p160_p10) target bundleno = 171 (0xab), region = 32  ;;  %415 = vset.pattern.permute.xlu0 (!%p160_p10), %v515_v1  ;;  %416 = vset.pattern.permute.xlu1 (!%p160_p10), %v516_v2  ;;  %v196_v3 = vld [vmem:[%s683_s1] sm:$0xff] (!%p160_p10)  ;;  %p188_p13 = scmp.lt.s32.totalorder (!%p160_p10), %s497_s15, 1 }
  0x12   : > { %s608_s30 = scalar_select %p105_p11, %s493_s14, %s107_s28  }
  0x13   : > { %204 = vperm.xlu0 (!%p160_p10), %415, %v195_v0   ;;  %214 = vperm.xlu1 (!%p160_p10), %416, %v195_v0   ;;  %v208_v6 = vshrl.u32 (!%p160_p10), %v207_v5, 7  ;;  %s183_s28 = sand.u32 (!%p160_p10), 1, %s489_s13   ;;  %s337_s4 = sshll.u32 (!%p160_p10), %s501_s16, 1 }
  0x14   : > { %s333_s29 = sshll.u32 (!%p160_p10), %s183_s28, 3  ;;  %s246_s5 = sadd.s32 (!%p160_p10), %s497_s15, %s337_s4 }
  0x15   : > { %v209_v7 = vsub.s32 (!%p160_p10), 0, %v208_v6  ;;  %v219_v9 = vsub.s32 (!%p160_p10), 1, %v208_v6  ;;  %v229_v10 = vsub.s32 (!%p160_p10), 2, %v208_v6  ;;  %s338_s6 = sshll.u32 (!%p160_p10), %s246_s5, 7  ;;  %s185_s7 = scalar_lea.vmem (!%p160_p10), [#allocation2], %s333_s29 }
  0x17   : > { %199 = vperm.xlu0 (!%p160_p10), %415, %v196_v3   ;;  %417 = vset.pattern.permute.xlu1 (!%p160_p10), %v517_v4 }
  0x18   : > { %224 = vperm.xlu1 %417, %v195_v0   ;;  %s187_s8 = scalar_select %p186_p12, %s501_s16, 2 }
  0x19   : > { %s189_s9 = scalar_select %p188_p13, %s497_s15, 1 }
  0x1a   : > { %s334_s10 = sshll.u32 %s187_s8, 1  ;;  %s250_s8 = sshll.u32 %s185_s7, 4  ;;  %s631_s8 = int_to_ptr.vmem [resolvable:$true] %s250_s8 }
  0x1b   : > { %418 = vset.pattern.permute.xlu0 %v517_v4  ;;  %s191_s11 = sadd.s32 %s334_s10, %s189_s9  ;;  %s235_s15 = scalar_lea.sflag [#allocation3], %s183_s28 }
  0x1c   : > { %s335_s20 = sshll.u32 %s191_s11, 2  ;;  %s629_s11 = scalar_lea.hbm %s685_s3, %s338_s6 }
  0x1d   : > { %s193_s27 = scalar_lea.vmem %s684_s2, %s335_s20  ;;  %s419_s16 = scalar_lea.vmem %s631_s8, 128 }
  0x1e   : > { %v194_v8 = vld [vmem:[%s193_s27] sm:$0x7]  ;;  %p420_p0 = scmp.ne.s32.totalorder %s631_s8, %s419_s16  ;;  %s518_s20 = smov [#allocation2]  }
  0x1f   : > { %v210_v11 = vrot.slane %v194_v8, %v209_v7  ;;  %v220_v14 = vrot.slane %v194_v8, %v219_v9  ;;  %v230_v15 = vrot.slane %v194_v8, %v229_v10  ;;  %s423_s21 = sshll.u32 %s518_s20, 4  ;;  %s424_s21 = int_to_ptr.vmem [resolvable:$false] %s423_s21 }
  0x20   : > { %p421_p1 = pnand %p420_p0, %p590_p3  ;;  %s425_s24 = scalar_lea.vmem %s424_s21, 256 }
  0x21   : > { %p426_p4 = scmp.lt.s32.totalorder %s631_s8, %s424_s21  ;;  %p427_p5 = scmp.lt.s32.totalorder %s425_s24, %s419_s16 }
  0x22   : > { %p422_p2 = pneg %p421_p1 }
  0x23   : > { %p428_p6 = por %p427_p5, %p426_p4 }
  0x25   : > { %p429_p7 = pnand %p428_p6, %p422_p2 }
  0x92   : > { %v205_v12 = vpop.permute.xlu0 %204  ;;  %v215_v13 = vpop.permute.xlu1 %214 }
  0x93   : > { %v211_v16 = vmul.f32 %v210_v11, %v205_v12  ;;  %v221_v18 = vmul.f32 %v220_v14, %v215_v13 }
  0x96   : > { %v200_v17 = vpop.permute.xlu0 %199 }
  0x97   : > { %v212_v19 = vadd.f32 %v211_v16, %v200_v17  ;;  %v225_v20 = vpop.permute.xlu1 %224 }
  0x98   : > { %v231_v21 = vmul.f32 %v230_v15, %v225_v20 }
  0x99   : > { %v222_v22 = vadd.f32 %v221_v18, %v212_v19 }
  0x9b   : > { %v232_v23 = vadd.f32 %v231_v21, %v222_v22 }
  0x9d   : > { %233 = vst [vmem:[%s185_s7] sm:$0xff] %v232_v23 }
  0x9e   : > { %432 = shalt.err (!%p429_p7)
}
  0x9f   : > { %s433_s27 = scalar_lea.hbm %s629_s11, 128  ;;  %s437_s4 = scalar_lea.hbm %s685_s3, 768 }
  0xa0   : > { %p434_p9 = scmp.ne.s32.totalorder %s629_s11, %s433_s27  ;;  %p438_p12 = scmp.lt.u32.totalorder %s629_s11, %s685_s3 }
  0xa1   : > { %p439_p13 = scmp.lt.u32.totalorder %s437_s4, %s433_s27  ;;  %p441_p1 = scmp.lt.u32.totalorder %s433_s27, %s629_s11 }
  0xa2   : > { %p435_p10 = pnand %p434_p9, %p590_p3 }
  0xa3   : > { %p440_p0 = por %p439_p13, %p438_p12 }
  0xa4   : > { %p436_p11 = pneg %p435_p10 }
  0xa5   : > { %p442_p2 = por %p441_p1, %p440_p0 }
  0xa7   : > { %p443_p4 = pnand %p442_p2, %p436_p11 }
  0xa9   : > { %446 = shalt.err (!%p443_p4)
}
  0xaa   : > { %341 = dma.vmem_to_hbm [thread:$0]  (%p590_p3), %s631_s8, 128, %s629_s11, %s235_s15  }
  0xab PF: > { %p347_p5 = scmp.ge.s32.totalorder %s513_s19, 2  ;;  %s262_s7 = sand.u32 1, %s485_s12  }
  0xac   : > { %s263_s9 = scalar_lea.sflag [#allocation3], %s262_s7 }
  0xad   : > { %p344_p6 = pnand %p347_p5, %p599_p8 }
  0xaf   : > { %480 = dma.done.wait (!%p344_p6), %s263_s9, 128  }
  0xb0   : > { %482 = vsyncadd (!%p344_p6), %s263_s9, 4294967168  ;;  %s16_s19 = sadd.s32 1, %s513_s19   ;;  %s688_s12 = smov %s489_s13 }
  0xb1   : > { %p13_p7 = scmp.ge.s32.totalorder %s16_s19, 8   ;;  %s689_s13 = smov %s493_s14 }
  0xb2   : > { %s690_s14 = smov %s608_s30  ;;  %s691_s15 = smov %s505_s17 }
  0xb3   : > { %s692_s16 = smov %s509_s18  ;;  %s693_s17 = smov %s696_s22 }
  0xb4   : > { %s694_s18 = smov %s700_s23  ;;  %15 = sbr.rel (!%p13_p7) target bundleno = 5 (0x5), region = 67 }
  0xbb   :  { %268 = vsyncpa [#allocation3], 1 }
  0xbc   :  { %270 = vsyncpa [#allocation3 + $0x1], 1 }

</bundles_post_ra>
